<compile_context>
chip_gen: v7x
topology: tpu7x:2x2x1
jax: 0.10.0
libtpu: 0.0.40
codegen_flags: <defaults>
</compile_context>

<pallas_src>
import jax
import jax.numpy as jnp
from jax import lax
from jax.experimental import pallas as pl
from jax.experimental.pallas import tpu as pltpu


def make_ctc_bilstm_kernel(T, B, H):
    """Fused bidirectional-LSTM + FC kernel for static (T, B, H)."""
    H2, H4, H6, H8 = 2 * H, 4 * H, 6 * H, 8 * H

    def kernel(x_ref, wih_ref, b_ref, whh_ref, wfc_ref, bfc_ref,
               out_ref, gx_ref, hs_ref):
        # ---- 1) Hoisted input projection: one GEMM for all timesteps & both
        #         directions (biases folded in).  Row t*B+b of gx holds the
        #         interleaved fwd(t)/bwd(T-1-t) gate pre-activations.
        gx_ref[...] = (jnp.dot(x_ref[...], wih_ref[...],
                               preferred_element_type=jnp.float32)
                       + b_ref[...])

        # ---- 2) Serial recurrence: one block-diagonal MXU op per step,
        #         joint (B, 2H) gate math for both directions.
        whh = whh_ref[...]                        # (2H, 8H), loaded once

        def step(t, carry):
            h, c = carry                          # (B, 2H): [h_fwd | h_bwd]
            tb = T - 1 - t
            rec = jnp.dot(h, whh, preferred_element_type=jnp.float32)  # (B, 8H)
            g = rec + gx_ref[pl.ds(t * B, B), :]                        # (B, 8H)
            i_g = jax.nn.sigmoid(g[:, 0:H2])      # [i_f | i_b]
            f_g = jax.nn.sigmoid(g[:, H2:H4])     # [f_f | f_b]
            g_g = jnp.tanh(g[:, H4:H6])           # [g_f | g_b]
            o_g = jax.nn.sigmoid(g[:, H6:H8])     # [o_f | o_b]
            c = f_g * c + i_g * g_g
            h = o_g * jnp.tanh(c)
            # PyTorch output layout: row for time tau holds [h_fwd(tau) | h_bwd(tau)]
            hs_ref[pl.ds(t * B, B), 0:H] = h[:, 0:H]      # fwd hidden @ time t
            hs_ref[pl.ds(tb * B, B), H:H2] = h[:, H:H2]   # bwd hidden @ time T-1-t
            return h, c

        z = jnp.zeros((B, H2), jnp.float32)
        unroll = True if T <= 32 else 4
        lax.fori_loop(0, T, step, (z, z), unroll=unroll)

        # ---- 3) Classifier: single slab GEMM over all T*B rows, one
        #         lane-dense store (O padded to a multiple of 128).
        out_ref[...] = (jnp.dot(hs_ref[...], wfc_ref[...],
                                preferred_element_type=jnp.float32)
                        + bfc_ref[...])

    return kernel


def _interleave_gates(w_f, w_b, H):
    """[i|f|g|o] x 2 directions -> [i_f,i_b | f_f,f_b | g_f,g_b | o_f,o_b]."""
    parts = []
    for k in range(4):
        parts.append(w_f[:, k * H:(k + 1) * H])
        parts.append(w_b[:, k * H:(k + 1) * H])
    return jnp.concatenate(parts, axis=1)


def ctc_model_forward(x_bdt, params):
    B, D, T = x_bdt.shape
    H = params['whh_f'].shape[0]
    O = params['wfc'].shape[1]
    O_pad = ((O + 127) // 128) * 128

    # (B, D, T) -> (T, B, D); pack each row with its time-mirrored partner so
    # one GEMM yields both directions' pre-activations for loop step t.
    x_tbd = jnp.transpose(x_bdt, (2, 0, 1))                       # (T, B, D)
    x_cat = jnp.concatenate([x_tbd, x_tbd[::-1]], axis=-1)        # (T, B, 2D)
    x_cat = x_cat.reshape(T * B, 2 * D)

    # One-time parameter fusion / interleave / padding (plain XLA, outside the
    # kernel hot path).
    zD = jnp.zeros_like(params['wih_f'])                          # (D, 4H)
    zH = jnp.zeros_like(params['whh_f'])                          # (H, 4H)
    wih_blk = jnp.concatenate(
        [_interleave_gates(params['wih_f'], zD, H),               # x(t)      -> fwd gates
         _interleave_gates(zD, params['wih_b'], H)], axis=0)      # x(T-1-t)  -> bwd gates
    whh_blk = jnp.concatenate(
        [_interleave_gates(params['whh_f'], zH, H),               # h_fwd -> fwd gates
         _interleave_gates(zH, params['whh_b'], H)], axis=0)      # h_bwd -> bwd gates
    b_cat = _interleave_gates(params['b_f'], params['b_b'], H)    # (1, 8H)
    wfc_p = jnp.pad(params['wfc'], ((0, 0), (0, O_pad - O)))      # (2H, O_pad)
    bfc_p = jnp.pad(params['bfc'], ((0, 0), (0, O_pad - O)))      # (1, O_pad)

    kernel = make_ctc_bilstm_kernel(T, B, H)
    out2 = pl.pallas_call(
        kernel,
        out_shape=jax.ShapeDtypeStruct((T * B, O_pad), jnp.float32),
        scratch_shapes=[
            pltpu.VMEM((T * B, 8 * H), jnp.float32),   # precomputed x-gates (interleaved)
            pltpu.VMEM((T * B, 2 * H), jnp.float32),   # fwd|bwd hidden states (output order)
        ],
    )(x_cat, wih_blk, b_cat, whh_blk, wfc_p, bfc_p)

    # (T*B, O_pad) -> (T, B, O) -> (B, T, O)
    return jnp.transpose(out2.reshape(T, B, O_pad)[:, :, :O], (1, 0, 2))


def init_params(key, D, H, O):
    # Deterministic synthetic init, PyTorch-style U(-1/sqrt(H), 1/sqrt(H)).
    ks = jax.random.split(key, 10)
    s = float(1.0 / (H ** 0.5))
    u = lambda k, shape: jax.random.uniform(k, shape, jnp.float32, -s, s)
    return dict(
        wih_f=u(ks[0], (D, 4 * H)),                        # weight_ih_l0.T
        whh_f=u(ks[1], (H, 4 * H)),                        # weight_hh_l0.T
        b_f=u(ks[2], (1, 4 * H)) + u(ks[3], (1, 4 * H)),   # bias_ih + bias_hh
        wih_b=u(ks[4], (D, 4 * H)),                        # weight_ih_l0_reverse.T
        whh_b=u(ks[5], (H, 4 * H)),                        # weight_hh_l0_reverse.T
        b_b=u(ks[6], (1, 4 * H)) + u(ks[7], (1, 4 * H)),
        wfc=u(ks[8], (2 * H, O)),                          # fc.weight.T
        bfc=u(ks[9], (1, O)),                              # fc.bias
    )


def reference_forward(x_bdt, params):
    # Pure-JAX reference matching PyTorch nn.LSTM(bidirectional=True) + nn.Linear.
    x = jnp.transpose(x_bdt, (0, 2, 1))  # (B, T, D)
    B, T, _ = x.shape
    H = params['whh_f'].shape[0]

    def run_dir(wih, whh, b, reverse):
        xs = jnp.transpose(x, (1, 0, 2))  # (T, B, D)
        if reverse:
            xs = xs[::-1]

        def step(carry, x_t):
            h, c = carry
            gates = x_t @ wih + h @ whh + b
            i, f, g, o = jnp.split(gates, 4, axis=-1)
            i = jax.nn.sigmoid(i)
            f = jax.nn.sigmoid(f)
            g = jnp.tanh(g)
            o = jax.nn.sigmoid(o)
            c = f * c + i * g
            h = o * jnp.tanh(c)
            return (h, c), h

        z = jnp.zeros((B, H), jnp.float32)
        _, hs = lax.scan(step, (z, z), xs)
        if reverse:
            hs = hs[::-1]
        return jnp.transpose(hs, (1, 0, 2))  # (B, T, H)

    h_f = run_dir(params['wih_f'], params['whh_f'], params['b_f'], False)
    h_b = run_dir(params['wih_b'], params['whh_b'], params['b_b'], True)
    h = jnp.concatenate([h_f, h_b], axis=-1)  # (B, T, 2H)
    return h @ params['wfc'] + params['bfc']


if __name__ == "__main__":
    B, D, T, H, O = 2, 4, 8, 32, 16   # batch, input_dim, seq, hidden_dim, output_dim
    key = jax.random.PRNGKey(0)
    kx, kp = jax.random.split(key)
    x = jax.random.normal(kx, (B, D, T), jnp.float32)  # PyTorch module input (B, C, T)
    params = init_params(kp, D, H, O)

    fwd = jax.jit(ctc_model_forward)
    out = jax.block_until_ready(fwd(x, params))
    ref = reference_forward(x, params)

    assert out.shape == (B, T, O), out.shape
    assert jnp.allclose(out, ref, atol=1e-4, rtol=1e-4), "mismatch vs JAX reference"
    print("KERNEL_OK")
</pallas_src>

<mosaic_0001>
module attributes {stable_mosaic.version = 11 : i64} {
  func.func @kernel(%arg0: memref<16x8xf32, #tpu.memory_space<vmem>>, %arg1: memref<8x256xf32, #tpu.memory_space<vmem>>, %arg2: memref<1x256xf32, #tpu.memory_space<vmem>>, %arg3: memref<64x256xf32, #tpu.memory_space<vmem>>, %arg4: memref<64x128xf32, #tpu.memory_space<vmem>>, %arg5: memref<1x128xf32, #tpu.memory_space<vmem>>, %arg6: memref<16x128xf32, #tpu.memory_space<vmem>>, %arg7: memref<16x256xf32, #tpu.memory_space<vmem>>, %arg8: memref<16x64xf32, #tpu.memory_space<vmem>>) attributes {dimension_semantics = [], scalar_prefetch = 0 : i64, scratch_operands = 2 : i64, tpu.core_type = #tpu.core_type<tc>} {
    %c0 = arith.constant 0 : index
    %c0_0 = arith.constant 0 : index
    %0 = vector.load %arg0[%c0, %c0_0] : memref<16x8xf32, #tpu.memory_space<vmem>>, vector<16x8xf32>
    %c0_1 = arith.constant 0 : index
    %c0_2 = arith.constant 0 : index
    %1 = vector.load %arg1[%c0_1, %c0_2] : memref<8x256xf32, #tpu.memory_space<vmem>>, vector<8x256xf32>
    %cst = arith.constant dense<0.000000e+00> : vector<16x256xf32>
    %2 = tpu.matmul %0, %1, %cst {dimension_numbers = #tpu.dot_dimension_numbers<[1], [0], [0], [1], [0, 0, 1, 1], [], []>} : vector<16x8xf32>, vector<8x256xf32>, vector<16x256xf32> -> vector<16x256xf32>
    %c0_3 = arith.constant 0 : index
    %c0_4 = arith.constant 0 : index
    %3 = vector.load %arg2[%c0_3, %c0_4] : memref<1x256xf32, #tpu.memory_space<vmem>>, vector<1x256xf32>
    %4 = vector.broadcast %3 : vector<1x256xf32> to vector<16x256xf32>
    %5 = arith.addf %2, %4 : vector<16x256xf32>
    %c0_5 = arith.constant 0 : index
    %c0_6 = arith.constant 0 : index
    %6 = vector.load %arg7[%c0_5, %c0_6] : memref<16x256xf32, #tpu.memory_space<vmem>>, vector<16x256xf32>
    tpu.vector_store %arg7[%c0_5, %c0_6], %5 {strides = array<i32>} : memref<16x256xf32, #tpu.memory_space<vmem>>, vector<16x256xf32>,
    %c0_7 = arith.constant 0 : index
    %c0_8 = arith.constant 0 : index
    %7 = vector.load %arg3[%c0_7, %c0_8] : memref<64x256xf32, #tpu.memory_space<vmem>>, vector<64x256xf32>
    %cst_9 = arith.constant 0.000000e+00 : f32
    %8 = vector.broadcast %cst_9 : f32 to vector<2x64xf32>
    %c0_i32 = arith.constant 0 : i32
    %c7_i32 = arith.constant 7 : i32
    %9 = arith.subi %c7_i32, %c0_i32 : i32
    %cst_10 = arith.constant dense<0.000000e+00> : vector<2x256xf32>
    %10 = tpu.matmul %8, %7, %cst_10 {dimension_numbers = #tpu.dot_dimension_numbers<[1], [0], [0], [1], [0, 0, 1, 1], [], []>} : vector<2x64xf32>, vector<64x256xf32>, vector<2x256xf32> -> vector<2x256xf32>
    %c2_i32 = arith.constant 2 : i32
    %11 = arith.muli %c0_i32, %c2_i32 : i32
    %12 = arith.index_cast %11 : i32 to index
    %c0_11 = arith.constant 0 : index
    %13 = vector.load %arg7[%12, %c0_11] : memref<16x256xf32, #tpu.memory_space<vmem>>, vector<2x256xf32>
    %14 = arith.addf %10, %13 : vector<2x256xf32>
    %15 = vector.extract_strided_slice %14 {offsets = [0, 0], sizes = [2, 64], strides = [1, 1]} : vector<2x256xf32> to vector<2x64xf32>
    %16 = arith.negf %15 : vector<2x64xf32>
    %17 = math.exp %16 : vector<2x64xf32>
    %cst_12 = arith.constant 1.000000e+00 : f32
    %18 = vector.broadcast %cst_12 : f32 to vector<2x64xf32>
    %19 = arith.addf %18, %17 : vector<2x64xf32>
    %20 = arith.divf %18, %19 : vector<2x64xf32>
    %21 = vector.extract_strided_slice %14 {offsets = [0, 64], sizes = [2, 64], strides = [1, 1]} : vector<2x256xf32> to vector<2x64xf32>
    %22 = arith.negf %21 : vector<2x64xf32>
    %23 = math.exp %22 : vector<2x64xf32>
    %cst_13 = arith.constant 1.000000e+00 : f32
    %24 = vector.broadcast %cst_13 : f32 to vector<2x64xf32>
    %25 = arith.addf %24, %23 : vector<2x64xf32>
    %26 = arith.divf %24, %25 : vector<2x64xf32>
    %27 = vector.extract_strided_slice %14 {offsets = [0, 128], sizes = [2, 64], strides = [1, 1]} : vector<2x256xf32> to vector<2x64xf32>
    %28 = math.tanh %27 : vector<2x64xf32>
    %29 = vector.extract_strided_slice %14 {offsets = [0, 192], sizes = [2, 64], strides = [1, 1]} : vector<2x256xf32> to vector<2x64xf32>
    %30 = arith.negf %29 : vector<2x64xf32>
    %31 = math.exp %30 : vector<2x64xf32>
    %cst_14 = arith.constant 1.000000e+00 : f32
    %32 = vector.broadcast %cst_14 : f32 to vector<2x64xf32>
    %33 = arith.addf %32, %31 : vector<2x64xf32>
    %34 = arith.divf %32, %33 : vector<2x64xf32>
    %35 = arith.mulf %26, %8 : vector<2x64xf32>
    %36 = arith.mulf %20, %28 : vector<2x64xf32>
    %37 = arith.addf %35, %36 : vector<2x64xf32>
    %38 = math.tanh %37 : vector<2x64xf32>
    %39 = arith.mulf %34, %38 : vector<2x64xf32>
    %40 = vector.extract_strided_slice %39 {offsets = [0, 0], sizes = [2, 32], strides = [1, 1]} : vector<2x64xf32> to vector<2x32xf32>
    %c2_i32_15 = arith.constant 2 : i32
    %41 = arith.muli %c0_i32, %c2_i32_15 : i32
    %42 = arith.index_cast %41 : i32 to index
    %c0_16 = arith.constant 0 : index
    %43 = vector.load %arg8[%42, %c0_16] : memref<16x64xf32, #tpu.memory_space<vmem>>, vector<2x32xf32>
    tpu.vector_store %arg8[%42, %c0_16], %40 {strides = array<i32>} : memref<16x64xf32, #tpu.memory_space<vmem>>, vector<2x32xf32>,
    %44 = vector.extract_strided_slice %39 {offsets = [0, 32], sizes = [2, 32], strides = [1, 1]} : vector<2x64xf32> to vector<2x32xf32>
    %c2_i32_17 = arith.constant 2 : i32
    %45 = arith.muli %9, %c2_i32_17 : i32
    %46 = arith.index_cast %45 : i32 to index
    %c32 = arith.constant 32 : index
    %47 = vector.load %arg8[%46, %c32] : memref<16x64xf32, #tpu.memory_space<vmem>>, vector<2x32xf32>
    tpu.vector_store %arg8[%46, %c32], %44 {strides = array<i32>} : memref<16x64xf32, #tpu.memory_space<vmem>>, vector<2x32xf32>,
    %c1_i32 = arith.constant 1 : i32
    %c7_i32_18 = arith.constant 7 : i32
    %48 = arith.subi %c7_i32_18, %c1_i32 : i32
    %cst_19 = arith.constant dense<0.000000e+00> : vector<2x256xf32>
    %49 = tpu.matmul %39, %7, %cst_19 {dimension_numbers = #tpu.dot_dimension_numbers<[1], [0], [0], [1], [0, 0, 1, 1], [], []>} : vector<2x64xf32>, vector<64x256xf32>, vector<2x256xf32> -> vector<2x256xf32>
    %c2_i32_20 = arith.constant 2 : i32
    %50 = arith.muli %c1_i32, %c2_i32_20 : i32
    %51 = arith.index_cast %50 : i32 to index
    %c0_21 = arith.constant 0 : index
    %52 = vector.load %arg7[%51, %c0_21] : memref<16x256xf32, #tpu.memory_space<vmem>>, vector<2x256xf32>
    %53 = arith.addf %49, %52 : vector<2x256xf32>
    %54 = vector.extract_strided_slice %53 {offsets = [0, 0], sizes = [2, 64], strides = [1, 1]} : vector<2x256xf32> to vector<2x64xf32>
    %55 = arith.negf %54 : vector<2x64xf32>
    %56 = math.exp %55 : vector<2x64xf32>
    %cst_22 = arith.constant 1.000000e+00 : f32
    %57 = vector.broadcast %cst_22 : f32 to vector<2x64xf32>
    %58 = arith.addf %57, %56 : vector<2x64xf32>
    %59 = arith.divf %57, %58 : vector<2x64xf32>
    %60 = vector.extract_strided_slice %53 {offsets = [0, 64], sizes = [2, 64], strides = [1, 1]} : vector<2x256xf32> to vector<2x64xf32>
    %61 = arith.negf %60 : vector<2x64xf32>
    %62 = math.exp %61 : vector<2x64xf32>
    %cst_23 = arith.constant 1.000000e+00 : f32
    %63 = vector.broadcast %cst_23 : f32 to vector<2x64xf32>
    %64 = arith.addf %63, %62 : vector<2x64xf32>
    %65 = arith.divf %63, %64 : vector<2x64xf32>
    %66 = vector.extract_strided_slice %53 {offsets = [0, 128], sizes = [2, 64], strides = [1, 1]} : vector<2x256xf32> to vector<2x64xf32>
    %67 = math.tanh %66 : vector<2x64xf32>
    %68 = vector.extract_strided_slice %53 {offsets = [0, 192], sizes = [2, 64], strides = [1, 1]} : vector<2x256xf32> to vector<2x64xf32>
    %69 = arith.negf %68 : vector<2x64xf32>
    %70 = math.exp %69 : vector<2x64xf32>
    %cst_24 = arith.constant 1.000000e+00 : f32
    %71 = vector.broadcast %cst_24 : f32 to vector<2x64xf32>
    %72 = arith.addf %71, %70 : vector<2x64xf32>
    %73 = arith.divf %71, %72 : vector<2x64xf32>
    %74 = arith.mulf %65, %37 : vector<2x64xf32>
    %75 = arith.mulf %59, %67 : vector<2x64xf32>
    %76 = arith.addf %74, %75 : vector<2x64xf32>
    %77 = math.tanh %76 : vector<2x64xf32>
    %78 = arith.mulf %73, %77 : vector<2x64xf32>
    %79 = vector.extract_strided_slice %78 {offsets = [0, 0], sizes = [2, 32], strides = [1, 1]} : vector<2x64xf32> to vector<2x32xf32>
    %c2_i32_25 = arith.constant 2 : i32
    %80 = arith.muli %c1_i32, %c2_i32_25 : i32
    %81 = arith.index_cast %80 : i32 to index
    %c0_26 = arith.constant 0 : index
    %82 = vector.load %arg8[%81, %c0_26] : memref<16x64xf32, #tpu.memory_space<vmem>>, vector<2x32xf32>
    tpu.vector_store %arg8[%81, %c0_26], %79 {strides = array<i32>} : memref<16x64xf32, #tpu.memory_space<vmem>>, vector<2x32xf32>,
    %83 = vector.extract_strided_slice %78 {offsets = [0, 32], sizes = [2, 32], strides = [1, 1]} : vector<2x64xf32> to vector<2x32xf32>
    %c2_i32_27 = arith.constant 2 : i32
    %84 = arith.muli %48, %c2_i32_27 : i32
    %85 = arith.index_cast %84 : i32 to index
    %c32_28 = arith.constant 32 : index
    %86 = vector.load %arg8[%85, %c32_28] : memref<16x64xf32, #tpu.memory_space<vmem>>, vector<2x32xf32>
    tpu.vector_store %arg8[%85, %c32_28], %83 {strides = array<i32>} : memref<16x64xf32, #tpu.memory_space<vmem>>, vector<2x32xf32>,
    %c2_i32_29 = arith.constant 2 : i32
    %c7_i32_30 = arith.constant 7 : i32
    %87 = arith.subi %c7_i32_30, %c2_i32_29 : i32
    %cst_31 = arith.constant dense<0.000000e+00> : vector<2x256xf32>
    %88 = tpu.matmul %78, %7, %cst_31 {dimension_numbers = #tpu.dot_dimension_numbers<[1], [0], [0], [1], [0, 0, 1, 1], [], []>} : vector<2x64xf32>, vector<64x256xf32>, vector<2x256xf32> -> vector<2x256xf32>
    %c2_i32_32 = arith.constant 2 : i32
    %89 = arith.muli %c2_i32_29, %c2_i32_32 : i32
    %90 = arith.index_cast %89 : i32 to index
    %c0_33 = arith.constant 0 : index
    %91 = vector.load %arg7[%90, %c0_33] : memref<16x256xf32, #tpu.memory_space<vmem>>, vector<2x256xf32>
    %92 = arith.addf %88, %91 : vector<2x256xf32>
    %93 = vector.extract_strided_slice %92 {offsets = [0, 0], sizes = [2, 64], strides = [1, 1]} : vector<2x256xf32> to vector<2x64xf32>
    %94 = arith.negf %93 : vector<2x64xf32>
    %95 = math.exp %94 : vector<2x64xf32>
    %cst_34 = arith.constant 1.000000e+00 : f32
    %96 = vector.broadcast %cst_34 : f32 to vector<2x64xf32>
    %97 = arith.addf %96, %95 : vector<2x64xf32>
    %98 = arith.divf %96, %97 : vector<2x64xf32>
    %99 = vector.extract_strided_slice %92 {offsets = [0, 64], sizes = [2, 64], strides = [1, 1]} : vector<2x256xf32> to vector<2x64xf32>
    %100 = arith.negf %99 : vector<2x64xf32>
    %101 = math.exp %100 : vector<2x64xf32>
    %cst_35 = arith.constant 1.000000e+00 : f32
    %102 = vector.broadcast %cst_35 : f32 to vector<2x64xf32>
    %103 = arith.addf %102, %101 : vector<2x64xf32>
    %104 = arith.divf %102, %103 : vector<2x64xf32>
    %105 = vector.extract_strided_slice %92 {offsets = [0, 128], sizes = [2, 64], strides = [1, 1]} : vector<2x256xf32> to vector<2x64xf32>
    %106 = math.tanh %105 : vector<2x64xf32>
    %107 = vector.extract_strided_slice %92 {offsets = [0, 192], sizes = [2, 64], strides = [1, 1]} : vector<2x256xf32> to vector<2x64xf32>
    %108 = arith.negf %107 : vector<2x64xf32>
    %109 = math.exp %108 : vector<2x64xf32>
    %cst_36 = arith.constant 1.000000e+00 : f32
    %110 = vector.broadcast %cst_36 : f32 to vector<2x64xf32>
    %111 = arith.addf %110, %109 : vector<2x64xf32>
    %112 = arith.divf %110, %111 : vector<2x64xf32>
    %113 = arith.mulf %104, %76 : vector<2x64xf32>
    %114 = arith.mulf %98, %106 : vector<2x64xf32>
    %115 = arith.addf %113, %114 : vector<2x64xf32>
    %116 = math.tanh %115 : vector<2x64xf32>
    %117 = arith.mulf %112, %116 : vector<2x64xf32>
    %118 = vector.extract_strided_slice %117 {offsets = [0, 0], sizes = [2, 32], strides = [1, 1]} : vector<2x64xf32> to vector<2x32xf32>
    %c2_i32_37 = arith.constant 2 : i32
    %119 = arith.muli %c2_i32_29, %c2_i32_37 : i32
    %120 = arith.index_cast %119 : i32 to index
    %c0_38 = arith.constant 0 : index
    %121 = vector.load %arg8[%120, %c0_38] : memref<16x64xf32, #tpu.memory_space<vmem>>, vector<2x32xf32>
    tpu.vector_store %arg8[%120, %c0_38], %118 {strides = array<i32>} : memref<16x64xf32, #tpu.memory_space<vmem>>, vector<2x32xf32>,
    %122 = vector.extract_strided_slice %117 {offsets = [0, 32], sizes = [2, 32], strides = [1, 1]} : vector<2x64xf32> to vector<2x32xf32>
    %c2_i32_39 = arith.constant 2 : i32
    %123 = arith.muli %87, %c2_i32_39 : i32
    %124 = arith.index_cast %123 : i32 to index
    %c32_40 = arith.constant 32 : index
    %125 = vector.load %arg8[%124, %c32_40] : memref<16x64xf32, #tpu.memory_space<vmem>>, vector<2x32xf32>
    tpu.vector_store %arg8[%124, %c32_40], %122 {strides = array<i32>} : memref<16x64xf32, #tpu.memory_space<vmem>>, vector<2x32xf32>,
    %c3_i32 = arith.constant 3 : i32
    %c7_i32_41 = arith.constant 7 : i32
    %126 = arith.subi %c7_i32_41, %c3_i32 : i32
    %cst_42 = arith.constant dense<0.000000e+00> : vector<2x256xf32>
    %127 = tpu.matmul %117, %7, %cst_42 {dimension_numbers = #tpu.dot_dimension_numbers<[1], [0], [0], [1], [0, 0, 1, 1], [], []>} : vector<2x64xf32>, vector<64x256xf32>, vector<2x256xf32> -> vector<2x256xf32>
    %c2_i32_43 = arith.constant 2 : i32
    %128 = arith.muli %c3_i32, %c2_i32_43 : i32
    %129 = arith.index_cast %128 : i32 to index
    %c0_44 = arith.constant 0 : index
    %130 = vector.load %arg7[%129, %c0_44] : memref<16x256xf32, #tpu.memory_space<vmem>>, vector<2x256xf32>
    %131 = arith.addf %127, %130 : vector<2x256xf32>
    %132 = vector.extract_strided_slice %131 {offsets = [0, 0], sizes = [2, 64], strides = [1, 1]} : vector<2x256xf32> to vector<2x64xf32>
    %133 = arith.negf %132 : vector<2x64xf32>
    %134 = math.exp %133 : vector<2x64xf32>
    %cst_45 = arith.constant 1.000000e+00 : f32
    %135 = vector.broadcast %cst_45 : f32 to vector<2x64xf32>
    %136 = arith.addf %135, %134 : vector<2x64xf32>
    %137 = arith.divf %135, %136 : vector<2x64xf32>
    %138 = vector.extract_strided_slice %131 {offsets = [0, 64], sizes = [2, 64], strides = [1, 1]} : vector<2x256xf32> to vector<2x64xf32>
    %139 = arith.negf %138 : vector<2x64xf32>
    %140 = math.exp %139 : vector<2x64xf32>
    %cst_46 = arith.constant 1.000000e+00 : f32
    %141 = vector.broadcast %cst_46 : f32 to vector<2x64xf32>
    %142 = arith.addf %141, %140 : vector<2x64xf32>
    %143 = arith.divf %141, %142 : vector<2x64xf32>
    %144 = vector.extract_strided_slice %131 {offsets = [0, 128], sizes = [2, 64], strides = [1, 1]} : vector<2x256xf32> to vector<2x64xf32>
    %145 = math.tanh %144 : vector<2x64xf32>
    %146 = vector.extract_strided_slice %131 {offsets = [0, 192], sizes = [2, 64], strides = [1, 1]} : vector<2x256xf32> to vector<2x64xf32>
    %147 = arith.negf %146 : vector<2x64xf32>
    %148 = math.exp %147 : vector<2x64xf32>
    %cst_47 = arith.constant 1.000000e+00 : f32
    %149 = vector.broadcast %cst_47 : f32 to vector<2x64xf32>
    %150 = arith.addf %149, %148 : vector<2x64xf32>
    %151 = arith.divf %149, %150 : vector<2x64xf32>
    %152 = arith.mulf %143, %115 : vector<2x64xf32>
    %153 = arith.mulf %137, %145 : vector<2x64xf32>
    %154 = arith.addf %152, %153 : vector<2x64xf32>
    %155 = math.tanh %154 : vector<2x64xf32>
    %156 = arith.mulf %151, %155 : vector<2x64xf32>
    %157 = vector.extract_strided_slice %156 {offsets = [0, 0], sizes = [2, 32], strides = [1, 1]} : vector<2x64xf32> to vector<2x32xf32>
    %c2_i32_48 = arith.constant 2 : i32
    %158 = arith.muli %c3_i32, %c2_i32_48 : i32
    %159 = arith.index_cast %158 : i32 to index
    %c0_49 = arith.constant 0 : index
    %160 = vector.load %arg8[%159, %c0_49] : memref<16x64xf32, #tpu.memory_space<vmem>>, vector<2x32xf32>
    tpu.vector_store %arg8[%159, %c0_49], %157 {strides = array<i32>} : memref<16x64xf32, #tpu.memory_space<vmem>>, vector<2x32xf32>,
    %161 = vector.extract_strided_slice %156 {offsets = [0, 32], sizes = [2, 32], strides = [1, 1]} : vector<2x64xf32> to vector<2x32xf32>
    %c2_i32_50 = arith.constant 2 : i32
    %162 = arith.muli %126, %c2_i32_50 : i32
    %163 = arith.index_cast %162 : i32 to index
    %c32_51 = arith.constant 32 : index
    %164 = vector.load %arg8[%163, %c32_51] : memref<16x64xf32, #tpu.memory_space<vmem>>, vector<2x32xf32>
    tpu.vector_store %arg8[%163, %c32_51], %161 {strides = array<i32>} : memref<16x64xf32, #tpu.memory_space<vmem>>, vector<2x32xf32>,
    %c4_i32 = arith.constant 4 : i32
    %c7_i32_52 = arith.constant 7 : i32
    %165 = arith.subi %c7_i32_52, %c4_i32 : i32
    %cst_53 = arith.constant dense<0.000000e+00> : vector<2x256xf32>
    %166 = tpu.matmul %156, %7, %cst_53 {dimension_numbers = #tpu.dot_dimension_numbers<[1], [0], [0], [1], [0, 0, 1, 1], [], []>} : vector<2x64xf32>, vector<64x256xf32>, vector<2x256xf32> -> vector<2x256xf32>
    %c2_i32_54 = arith.constant 2 : i32
    %167 = arith.muli %c4_i32, %c2_i32_54 : i32
    %168 = arith.index_cast %167 : i32 to index
    %c0_55 = arith.constant 0 : index
    %169 = vector.load %arg7[%168, %c0_55] : memref<16x256xf32, #tpu.memory_space<vmem>>, vector<2x256xf32>
    %170 = arith.addf %166, %169 : vector<2x256xf32>
    %171 = vector.extract_strided_slice %170 {offsets = [0, 0], sizes = [2, 64], strides = [1, 1]} : vector<2x256xf32> to vector<2x64xf32>
    %172 = arith.negf %171 : vector<2x64xf32>
    %173 = math.exp %172 : vector<2x64xf32>
    %cst_56 = arith.constant 1.000000e+00 : f32
    %174 = vector.broadcast %cst_56 : f32 to vector<2x64xf32>
    %175 = arith.addf %174, %173 : vector<2x64xf32>
    %176 = arith.divf %174, %175 : vector<2x64xf32>
    %177 = vector.extract_strided_slice %170 {offsets = [0, 64], sizes = [2, 64], strides = [1, 1]} : vector<2x256xf32> to vector<2x64xf32>
    %178 = arith.negf %177 : vector<2x64xf32>
    %179 = math.exp %178 : vector<2x64xf32>
    %cst_57 = arith.constant 1.000000e+00 : f32
    %180 = vector.broadcast %cst_57 : f32 to vector<2x64xf32>
    %181 = arith.addf %180, %179 : vector<2x64xf32>
    %182 = arith.divf %180, %181 : vector<2x64xf32>
    %183 = vector.extract_strided_slice %170 {offsets = [0, 128], sizes = [2, 64], strides = [1, 1]} : vector<2x256xf32> to vector<2x64xf32>
    %184 = math.tanh %183 : vector<2x64xf32>
    %185 = vector.extract_strided_slice %170 {offsets = [0, 192], sizes = [2, 64], strides = [1, 1]} : vector<2x256xf32> to vector<2x64xf32>
    %186 = arith.negf %185 : vector<2x64xf32>
    %187 = math.exp %186 : vector<2x64xf32>
    %cst_58 = arith.constant 1.000000e+00 : f32
    %188 = vector.broadcast %cst_58 : f32 to vector<2x64xf32>
    %189 = arith.addf %188, %187 : vector<2x64xf32>
    %190 = arith.divf %188, %189 : vector<2x64xf32>
    %191 = arith.mulf %182, %154 : vector<2x64xf32>
    %192 = arith.mulf %176, %184 : vector<2x64xf32>
    %193 = arith.addf %191, %192 : vector<2x64xf32>
    %194 = math.tanh %193 : vector<2x64xf32>
    %195 = arith.mulf %190, %194 : vector<2x64xf32>
    %196 = vector.extract_strided_slice %195 {offsets = [0, 0], sizes = [2, 32], strides = [1, 1]} : vector<2x64xf32> to vector<2x32xf32>
    %c2_i32_59 = arith.constant 2 : i32
    %197 = arith.muli %c4_i32, %c2_i32_59 : i32
    %198 = arith.index_cast %197 : i32 to index
    %c0_60 = arith.constant 0 : index
    %199 = vector.load %arg8[%198, %c0_60] : memref<16x64xf32, #tpu.memory_space<vmem>>, vector<2x32xf32>
    tpu.vector_store %arg8[%198, %c0_60], %196 {strides = array<i32>} : memref<16x64xf32, #tpu.memory_space<vmem>>, vector<2x32xf32>,
    %200 = vector.extract_strided_slice %195 {offsets = [0, 32], sizes = [2, 32], strides = [1, 1]} : vector<2x64xf32> to vector<2x32xf32>
    %c2_i32_61 = arith.constant 2 : i32
    %201 = arith.muli %165, %c2_i32_61 : i32
    %202 = arith.index_cast %201 : i32 to index
    %c32_62 = arith.constant 32 : index
    %203 = vector.load %arg8[%202, %c32_62] : memref<16x64xf32, #tpu.memory_space<vmem>>, vector<2x32xf32>
    tpu.vector_store %arg8[%202, %c32_62], %200 {strides = array<i32>} : memref<16x64xf32, #tpu.memory_space<vmem>>, vector<2x32xf32>,
    %c5_i32 = arith.constant 5 : i32
    %c7_i32_63 = arith.constant 7 : i32
    %204 = arith.subi %c7_i32_63, %c5_i32 : i32
    %cst_64 = arith.constant dense<0.000000e+00> : vector<2x256xf32>
    %205 = tpu.matmul %195, %7, %cst_64 {dimension_numbers = #tpu.dot_dimension_numbers<[1], [0], [0], [1], [0, 0, 1, 1], [], []>} : vector<2x64xf32>, vector<64x256xf32>, vector<2x256xf32> -> vector<2x256xf32>
    %c2_i32_65 = arith.constant 2 : i32
    %206 = arith.muli %c5_i32, %c2_i32_65 : i32
    %207 = arith.index_cast %206 : i32 to index
    %c0_66 = arith.constant 0 : index
    %208 = vector.load %arg7[%207, %c0_66] : memref<16x256xf32, #tpu.memory_space<vmem>>, vector<2x256xf32>
    %209 = arith.addf %205, %208 : vector<2x256xf32>
    %210 = vector.extract_strided_slice %209 {offsets = [0, 0], sizes = [2, 64], strides = [1, 1]} : vector<2x256xf32> to vector<2x64xf32>
    %211 = arith.negf %210 : vector<2x64xf32>
    %212 = math.exp %211 : vector<2x64xf32>
    %cst_67 = arith.constant 1.000000e+00 : f32
    %213 = vector.broadcast %cst_67 : f32 to vector<2x64xf32>
    %214 = arith.addf %213, %212 : vector<2x64xf32>
    %215 = arith.divf %213, %214 : vector<2x64xf32>
    %216 = vector.extract_strided_slice %209 {offsets = [0, 64], sizes = [2, 64], strides = [1, 1]} : vector<2x256xf32> to vector<2x64xf32>
    %217 = arith.negf %216 : vector<2x64xf32>
    %218 = math.exp %217 : vector<2x64xf32>
    %cst_68 = arith.constant 1.000000e+00 : f32
    %219 = vector.broadcast %cst_68 : f32 to vector<2x64xf32>
    %220 = arith.addf %219, %218 : vector<2x64xf32>
    %221 = arith.divf %219, %220 : vector<2x64xf32>
    %222 = vector.extract_strided_slice %209 {offsets = [0, 128], sizes = [2, 64], strides = [1, 1]} : vector<2x256xf32> to vector<2x64xf32>
    %223 = math.tanh %222 : vector<2x64xf32>
    %224 = vector.extract_strided_slice %209 {offsets = [0, 192], sizes = [2, 64], strides = [1, 1]} : vector<2x256xf32> to vector<2x64xf32>
    %225 = arith.negf %224 : vector<2x64xf32>
    %226 = math.exp %225 : vector<2x64xf32>
    %cst_69 = arith.constant 1.000000e+00 : f32
    %227 = vector.broadcast %cst_69 : f32 to vector<2x64xf32>
    %228 = arith.addf %227, %226 : vector<2x64xf32>
    %229 = arith.divf %227, %228 : vector<2x64xf32>
    %230 = arith.mulf %221, %193 : vector<2x64xf32>
    %231 = arith.mulf %215, %223 : vector<2x64xf32>
    %232 = arith.addf %230, %231 : vector<2x64xf32>
    %233 = math.tanh %232 : vector<2x64xf32>
    %234 = arith.mulf %229, %233 : vector<2x64xf32>
    %235 = vector.extract_strided_slice %234 {offsets = [0, 0], sizes = [2, 32], strides = [1, 1]} : vector<2x64xf32> to vector<2x32xf32>
    %c2_i32_70 = arith.constant 2 : i32
    %236 = arith.muli %c5_i32, %c2_i32_70 : i32
    %237 = arith.index_cast %236 : i32 to index
    %c0_71 = arith.constant 0 : index
    %238 = vector.load %arg8[%237, %c0_71] : memref<16x64xf32, #tpu.memory_space<vmem>>, vector<2x32xf32>
    tpu.vector_store %arg8[%237, %c0_71], %235 {strides = array<i32>} : memref<16x64xf32, #tpu.memory_space<vmem>>, vector<2x32xf32>,
    %239 = vector.extract_strided_slice %234 {offsets = [0, 32], sizes = [2, 32], strides = [1, 1]} : vector<2x64xf32> to vector<2x32xf32>
    %c2_i32_72 = arith.constant 2 : i32
    %240 = arith.muli %204, %c2_i32_72 : i32
    %241 = arith.index_cast %240 : i32 to index
    %c32_73 = arith.constant 32 : index
    %242 = vector.load %arg8[%241, %c32_73] : memref<16x64xf32, #tpu.memory_space<vmem>>, vector<2x32xf32>
    tpu.vector_store %arg8[%241, %c32_73], %239 {strides = array<i32>} : memref<16x64xf32, #tpu.memory_space<vmem>>, vector<2x32xf32>,
    %c6_i32 = arith.constant 6 : i32
    %c7_i32_74 = arith.constant 7 : i32
    %243 = arith.subi %c7_i32_74, %c6_i32 : i32
    %cst_75 = arith.constant dense<0.000000e+00> : vector<2x256xf32>
    %244 = tpu.matmul %234, %7, %cst_75 {dimension_numbers = #tpu.dot_dimension_numbers<[1], [0], [0], [1], [0, 0, 1, 1], [], []>} : vector<2x64xf32>, vector<64x256xf32>, vector<2x256xf32> -> vector<2x256xf32>
    %c2_i32_76 = arith.constant 2 : i32
    %245 = arith.muli %c6_i32, %c2_i32_76 : i32
    %246 = arith.index_cast %245 : i32 to index
    %c0_77 = arith.constant 0 : index
    %247 = vector.load %arg7[%246, %c0_77] : memref<16x256xf32, #tpu.memory_space<vmem>>, vector<2x256xf32>
    %248 = arith.addf %244, %247 : vector<2x256xf32>
    %249 = vector.extract_strided_slice %248 {offsets = [0, 0], sizes = [2, 64], strides = [1, 1]} : vector<2x256xf32> to vector<2x64xf32>
    %250 = arith.negf %249 : vector<2x64xf32>
    %251 = math.exp %250 : vector<2x64xf32>
    %cst_78 = arith.constant 1.000000e+00 : f32
    %252 = vector.broadcast %cst_78 : f32 to vector<2x64xf32>
    %253 = arith.addf %252, %251 : vector<2x64xf32>
    %254 = arith.divf %252, %253 : vector<2x64xf32>
    %255 = vector.extract_strided_slice %248 {offsets = [0, 64], sizes = [2, 64], strides = [1, 1]} : vector<2x256xf32> to vector<2x64xf32>
    %256 = arith.negf %255 : vector<2x64xf32>
    %257 = math.exp %256 : vector<2x64xf32>
    %cst_79 = arith.constant 1.000000e+00 : f32
    %258 = vector.broadcast %cst_79 : f32 to vector<2x64xf32>
    %259 = arith.addf %258, %257 : vector<2x64xf32>
    %260 = arith.divf %258, %259 : vector<2x64xf32>
    %261 = vector.extract_strided_slice %248 {offsets = [0, 128], sizes = [2, 64], strides = [1, 1]} : vector<2x256xf32> to vector<2x64xf32>
    %262 = math.tanh %261 : vector<2x64xf32>
    %263 = vector.extract_strided_slice %248 {offsets = [0, 192], sizes = [2, 64], strides = [1, 1]} : vector<2x256xf32> to vector<2x64xf32>
    %264 = arith.negf %263 : vector<2x64xf32>
    %265 = math.exp %264 : vector<2x64xf32>
    %cst_80 = arith.constant 1.000000e+00 : f32
    %266 = vector.broadcast %cst_80 : f32 to vector<2x64xf32>
    %267 = arith.addf %266, %265 : vector<2x64xf32>
    %268 = arith.divf %266, %267 : vector<2x64xf32>
    %269 = arith.mulf %260, %232 : vector<2x64xf32>
    %270 = arith.mulf %254, %262 : vector<2x64xf32>
    %271 = arith.addf %269, %270 : vector<2x64xf32>
    %272 = math.tanh %271 : vector<2x64xf32>
    %273 = arith.mulf %268, %272 : vector<2x64xf32>
    %274 = vector.extract_strided_slice %273 {offsets = [0, 0], sizes = [2, 32], strides = [1, 1]} : vector<2x64xf32> to vector<2x32xf32>
    %c2_i32_81 = arith.constant 2 : i32
    %275 = arith.muli %c6_i32, %c2_i32_81 : i32
    %276 = arith.index_cast %275 : i32 to index
    %c0_82 = arith.constant 0 : index
    %277 = vector.load %arg8[%276, %c0_82] : memref<16x64xf32, #tpu.memory_space<vmem>>, vector<2x32xf32>
    tpu.vector_store %arg8[%276, %c0_82], %274 {strides = array<i32>} : memref<16x64xf32, #tpu.memory_space<vmem>>, vector<2x32xf32>,
    %278 = vector.extract_strided_slice %273 {offsets = [0, 32], sizes = [2, 32], strides = [1, 1]} : vector<2x64xf32> to vector<2x32xf32>
    %c2_i32_83 = arith.constant 2 : i32
    %279 = arith.muli %243, %c2_i32_83 : i32
    %280 = arith.index_cast %279 : i32 to index
    %c32_84 = arith.constant 32 : index
    %281 = vector.load %arg8[%280, %c32_84] : memref<16x64xf32, #tpu.memory_space<vmem>>, vector<2x32xf32>
    tpu.vector_store %arg8[%280, %c32_84], %278 {strides = array<i32>} : memref<16x64xf32, #tpu.memory_space<vmem>>, vector<2x32xf32>,
    %c7_i32_85 = arith.constant 7 : i32
    %c7_i32_86 = arith.constant 7 : i32
    %282 = arith.subi %c7_i32_86, %c7_i32_85 : i32
    %cst_87 = arith.constant dense<0.000000e+00> : vector<2x256xf32>
    %283 = tpu.matmul %273, %7, %cst_87 {dimension_numbers = #tpu.dot_dimension_numbers<[1], [0], [0], [1], [0, 0, 1, 1], [], []>} : vector<2x64xf32>, vector<64x256xf32>, vector<2x256xf32> -> vector<2x256xf32>
    %c2_i32_88 = arith.constant 2 : i32
    %284 = arith.muli %c7_i32_85, %c2_i32_88 : i32
    %285 = arith.index_cast %284 : i32 to index
    %c0_89 = arith.constant 0 : index
    %286 = vector.load %arg7[%285, %c0_89] : memref<16x256xf32, #tpu.memory_space<vmem>>, vector<2x256xf32>
    %287 = arith.addf %283, %286 : vector<2x256xf32>
    %288 = vector.extract_strided_slice %287 {offsets = [0, 0], sizes = [2, 64], strides = [1, 1]} : vector<2x256xf32> to vector<2x64xf32>
    %289 = arith.negf %288 : vector<2x64xf32>
    %290 = math.exp %289 : vector<2x64xf32>
    %cst_90 = arith.constant 1.000000e+00 : f32
    %291 = vector.broadcast %cst_90 : f32 to vector<2x64xf32>
    %292 = arith.addf %291, %290 : vector<2x64xf32>
    %293 = arith.divf %291, %292 : vector<2x64xf32>
    %294 = vector.extract_strided_slice %287 {offsets = [0, 64], sizes = [2, 64], strides = [1, 1]} : vector<2x256xf32> to vector<2x64xf32>
    %295 = arith.negf %294 : vector<2x64xf32>
    %296 = math.exp %295 : vector<2x64xf32>
    %cst_91 = arith.constant 1.000000e+00 : f32
    %297 = vector.broadcast %cst_91 : f32 to vector<2x64xf32>
    %298 = arith.addf %297, %296 : vector<2x64xf32>
    %299 = arith.divf %297, %298 : vector<2x64xf32>
    %300 = vector.extract_strided_slice %287 {offsets = [0, 128], sizes = [2, 64], strides = [1, 1]} : vector<2x256xf32> to vector<2x64xf32>
    %301 = math.tanh %300 : vector<2x64xf32>
    %302 = vector.extract_strided_slice %287 {offsets = [0, 192], sizes = [2, 64], strides = [1, 1]} : vector<2x256xf32> to vector<2x64xf32>
    %303 = arith.negf %302 : vector<2x64xf32>
    %304 = math.exp %303 : vector<2x64xf32>
    %cst_92 = arith.constant 1.000000e+00 : f32
    %305 = vector.broadcast %cst_92 : f32 to vector<2x64xf32>
    %306 = arith.addf %305, %304 : vector<2x64xf32>
    %307 = arith.divf %305, %306 : vector<2x64xf32>
    %308 = arith.mulf %299, %271 : vector<2x64xf32>
    %309 = arith.mulf %293, %301 : vector<2x64xf32>
    %310 = arith.addf %308, %309 : vector<2x64xf32>
    %311 = math.tanh %310 : vector<2x64xf32>
    %312 = arith.mulf %307, %311 : vector<2x64xf32>
    %313 = vector.extract_strided_slice %312 {offsets = [0, 0], sizes = [2, 32], strides = [1, 1]} : vector<2x64xf32> to vector<2x32xf32>
    %c2_i32_93 = arith.constant 2 : i32
    %314 = arith.muli %c7_i32_85, %c2_i32_93 : i32
    %315 = arith.index_cast %314 : i32 to index
    %c0_94 = arith.constant 0 : index
    %316 = vector.load %arg8[%315, %c0_94] : memref<16x64xf32, #tpu.memory_space<vmem>>, vector<2x32xf32>
    tpu.vector_store %arg8[%315, %c0_94], %313 {strides = array<i32>} : memref<16x64xf32, #tpu.memory_space<vmem>>, vector<2x32xf32>,
    %317 = vector.extract_strided_slice %312 {offsets = [0, 32], sizes = [2, 32], strides = [1, 1]} : vector<2x64xf32> to vector<2x32xf32>
    %c2_i32_95 = arith.constant 2 : i32
    %318 = arith.muli %282, %c2_i32_95 : i32
    %319 = arith.index_cast %318 : i32 to index
    %c32_96 = arith.constant 32 : index
    %320 = vector.load %arg8[%319, %c32_96] : memref<16x64xf32, #tpu.memory_space<vmem>>, vector<2x32xf32>
    tpu.vector_store %arg8[%319, %c32_96], %317 {strides = array<i32>} : memref<16x64xf32, #tpu.memory_space<vmem>>, vector<2x32xf32>,
    %c8_i32 = arith.constant 8 : i32
    %c0_97 = arith.constant 0 : index
    %c0_98 = arith.constant 0 : index
    %321 = vector.load %arg8[%c0_97, %c0_98] : memref<16x64xf32, #tpu.memory_space<vmem>>, vector<16x64xf32>
    %c0_99 = arith.constant 0 : index
    %c0_100 = arith.constant 0 : index
    %322 = vector.load %arg4[%c0_99, %c0_100] : memref<64x128xf32, #tpu.memory_space<vmem>>, vector<64x128xf32>
    %cst_101 = arith.constant dense<0.000000e+00> : vector<16x128xf32>
    %323 = tpu.matmul %321, %322, %cst_101 {dimension_numbers = #tpu.dot_dimension_numbers<[1], [0], [0], [1], [0, 0, 1, 1], [], []>} : vector<16x64xf32>, vector<64x128xf32>, vector<16x128xf32> -> vector<16x128xf32>
    %c0_102 = arith.constant 0 : index
    %c0_103 = arith.constant 0 : index
    %324 = vector.load %arg5[%c0_102, %c0_103] : memref<1x128xf32, #tpu.memory_space<vmem>>, vector<1x128xf32>
    %325 = vector.broadcast %324 : vector<1x128xf32> to vector<16x128xf32>
    %326 = arith.addf %323, %325 : vector<16x128xf32>
    %c0_104 = arith.constant 0 : index
    %c0_105 = arith.constant 0 : index
    %327 = vector.load %arg6[%c0_104, %c0_105] : memref<16x128xf32, #tpu.memory_space<vmem>>, vector<16x128xf32>
    tpu.vector_store %arg6[%c0_104, %c0_105], %326 {strides = array<i32>} : memref<16x128xf32, #tpu.memory_space<vmem>>, vector<16x128xf32>,
    return
  }
}

</mosaic_0001>

<bundles_post_ra>
// kernel: ctc_model_forward.1
= control target key start
LH: loop header
LB: loop body
LE: loop exit
PB: predicated region body
PF: predicated region fallthrough
CT: control target
= control target key end

     0   :  { %v1410_v3 = vmov 0.0   ;;  %vm39_vm0 = vcmask 64512   ;;  %v29_v28 = vlaneseq  ;;  %vm246_vm1 = vcmask 254976   ;;  %s1677_s3 = inlined_call_operand.vmem [shape: f32[64,256], index: 3, kind: input, shape index: {}]   ;;  %s1678_s1 = inlined_call_operand.vmem [shape: f32[8,256], index: 1, kind: input, shape index: {}]   ;;  %s1679_s0 = inlined_call_operand.vmem [shape: f32[16,8], index: 0, kind: input, shape index: {}]   ;;  %s1680_s2 = inlined_call_operand.vmem [shape: f32[1,256], index: 2, kind: input, shape index: {}]   ;;  %s1681_s4 = inlined_call_operand.vmem [shape: f32[64,128], index: 4, kind: input, shape index: {}]   ;;  %s1682_s5 = inlined_call_operand.vmem [shape: f32[1,128], index: 5, kind: input, shape index: {}]   ;;  %s1683_s6 = inlined_call_operand.vmem [shape: f32[16,128], index: 6, kind: output, shape index: {}]  }
   0x1   :  { %v128_v0 = vld [vmem:[%s1677_s3 + $0x8] sm:$0xff]  ;;  %v130_v1 = vld [vmem:[%s1677_s3 + $0x18] sm:$0xff]  ;;  %v127_v2 = vld [vmem:[%s1677_s3] sm:$0xff]  ;;  %110 = vmatprep.mubr.f32.mxu0 %v1410_v3  ;;  %213 = vmatprep.mubr.f32.mxu1 %v1410_v3  ;;  %vm248_vm2 = vcmask 517376   ;;  %vm145_vm3 = vcmask 523264  }
   0x2   :  { %v1458_v4 = vpack.c.bf16 %v130_v1, %v128_v0  ;;  %v129_v5 = vld [vmem:[%s1677_s3 + $0x10] sm:$0xff]  ;;  %v26_v6 = vld [vmem:[%s1678_s1 + $0x8] sm:$0xff]  ;;  %v25_v7 = vld [vmem:[%s1678_s1] sm:$0xff]  ;;  %v30_v29 = vshrl.u32 %v29_v28, 7 }
   0x3   :  { %v1469_v8 = vpack.c.bf16 %v129_v5, %v127_v2  ;;  %46 = vmatprep.subr.mxu0 %v26_v6  ;;  %v132_v9 = vld [vmem:[%s1677_s3 + $0x28] sm:$0xff]  ;;  %v134_v10 = vld [vmem:[%s1677_s3 + $0x38] sm:$0xff]  ;;  %v23_v11 = vld [vmem:[%s1679_s0] sm:$0xff] }
   0x4   :  { %1169 = vmatprep.subr.bf16.mxu1 %v1458_v4  ;;  %47 = vmatpush1.msra.mxu0 %v25_v7  ;;  %v1481_v12 = vpack.c.bf16 %v134_v10, %v132_v9  ;;  %v131_v13 = vld [vmem:[%s1677_s3 + $0x20] sm:$0xff]  ;;  %v133_v14 = vld [vmem:[%s1677_s3 + $0x30] sm:$0xff]  ;;  %v136_v15 = vld [vmem:[%s1677_s3 + $0x48] sm:$0xff]  ;;  %v31_v30 = vsub.s32 0, %v30_v29  ;;  %v35_v32 = vsub.s32 1, %v30_v29 }
   0x5   :  { %1171 = vmatpush1.bf16.msra.mxu1 %v1469_v8  ;;  %1111 = vmatmul.mubr.msk.f32.vlgmr.msra.gmra.mrb[0].mxu0 %vm39_vm0, %v23_v11  ;;  %v1494_v16 = vpack.c.bf16 %v133_v14, %v131_v13  ;;  %v138_v17 = vld [vmem:[%s1677_s3 + $0x58] sm:$0xff]  ;;  %v135_v19 = vld [vmem:[%s1677_s3 + $0x40] sm:$0xff]  ;;  %v137_v20 = vld [vmem:[%s1677_s3 + $0x50] sm:$0xff] }
   0x6   :  { %1173 = vmatprep.subr.bf16.mxu1 %v1481_v12  ;;  %v1500_v18 = vpack.c.bf16 %v138_v17, %v136_v15  ;;  %1185 = vmatprep.subr.bf16.mxu0 %v1458_v4  ;;  %v140_v21 = vld [vmem:[%s1677_s3 + $0x68] sm:$0xff]  ;;  %v142_v22 = vld [vmem:[%s1677_s3 + $0x78] sm:$0xff]  ;;  %v1519_v23 = vpack.c.bf16 %v137_v20, %v135_v19  ;;  %v139_v25 = vld [vmem:[%s1677_s3 + $0x60] sm:$0xff] }
   0x7   :  { %1187 = vmatpush1.bf16.msra.mxu0 %v1469_v8  ;;  %116 = vmatprep.mubr.f32.mxu0 %v1410_v3  ;;  %v1522_v24 = vpack.c.bf16 %v142_v22, %v140_v21  ;;  %v141_v26 = vld [vmem:[%s1677_s3 + $0x70] sm:$0xff]  ;;  %v27_v31 = vld [vmem:[%s1680_s2] sm:$0x3]  ;;  %s1411_s2 = smov 64   ;;  %v24_v51 = vld [vmem:[%s1679_s0 + $0x8] sm:$0xff] }
   0x8   :  { %1189 = vmatprep.subr.bf16.mxu0 %v1481_v12  ;;  %v1533_v27 = vpack.c.bf16 %v141_v26, %v139_v25  ;;  %v32_v33 = vrot.slane %v27_v31, %v31_v30  ;;  %v36_v34 = vrot.slane %v27_v31, %v35_v32 }
   0x9   :  { %1175 = vmatpush1.bf16.msra.mxu1 %v1494_v16  ;;  %1112 = vmatmul.mubr.msk.f32.gmra.mrb[2].mxu0 %vm39_vm0, %v24_v51 }
   0xa   :  { %1177 = vmatprep.subr.bf16.mxu1 %v1500_v18  ;;  %324 = vmatprep.mubr.f32.mxu0 %v1410_v3 }
   0xb   :  { %1191 = vmatpush1.bf16.msra.mxu0 %v1494_v16 }
   0xc   :  { %1193 = vmatprep.subr.bf16.mxu0 %v1500_v18 }
   0xd   :  { %1179 = vmatpush1.bf16.msra.mxu1 %v1519_v23 }
   0xe   :  { %1181 = vmatprep.subr.bf16.mxu1 %v1522_v24 }
   0xf   :  { %1195 = vmatpush1.bf16.msra.mxu0 %v1519_v23 }
  0x10   :  { %1197 = vmatprep.subr.bf16.mxu0 %v1522_v24 }
  0x11   :  { %1183 = vmatpush1.bf16.msra.mxu1 %v1533_v27 }
  0x12   :  { %1201 = vmatprep.subr.bf16.mxu1 %v1458_v4 }
  0x13   :  { %1199 = vmatpush1.bf16.msra.mxu0 %v1533_v27 }
  0x14   :  { %214 = vmatmul.mubr.f32.vlgmr.msra.gmra.mrb[0].mxu1 %v1410_v3  ;;  %1217 = vmatprep.subr.bf16.mxu0 %v1458_v4 }
  0x15   :  { %1203 = vmatpush1.bf16.msra.mxu1 %v1469_v8  ;;  %433 = vmatprep.mubr.f32.mxu1 %v1410_v3 }
  0x16   :  { %1205 = vmatprep.subr.bf16.mxu1 %v1481_v12 }
  0x19   :  { %1207 = vmatpush1.bf16.msra.mxu1 %v1494_v16 }
  0x1a   :  { %1209 = vmatprep.subr.bf16.mxu1 %v1500_v18 }
  0x1d   :  { %1211 = vmatpush1.bf16.msra.mxu1 %v1519_v23 }
  0x1e   :  { %1213 = vmatprep.subr.bf16.mxu1 %v1522_v24 }
  0x21   :  { %1215 = vmatpush1.bf16.msra.mxu1 %v1533_v27 }
  0x22   :  { %1233 = vmatprep.subr.bf16.mxu1 %v1458_v4 }
  0xd8   :  { %v112_v35 = vpop.f32.mrb[0].mxu0 }
  0xd9   :  { %v113_v36 = vadd.f32 %v112_v35, %v32_v33  ;;  %v114_v37 = vpop.f32.mrb[1].mxu0 }
  0xda   :  { %v115_v38 = vadd.f32 %v114_v37, %v36_v34 }
  0xdb   :  { %123 = vst [vmem:[#allocation2] sm:$0xff] %v113_v36 }
  0xdc   :  { %124 = vst [vmem:[#allocation2 + $0x8] sm:$0xff] %v115_v38  ;;  %v118_v61 = vpop.f32.mrb[2].mxu0 }
  0xdd   :  { %v119_v62 = vadd.f32 %v118_v61, %v32_v33  ;;  %v120_v63 = vpop.f32.mrb[3].mxu0 }
  0xde   :  { %v121_v0 = vadd.f32 %v120_v63, %v36_v34 }
  0xdf   :  { %125 = vst [vmem:[#allocation2 + $0x10] sm:$0xff] %v119_v62 }
  0xe0   :  { %126 = vst [vmem:[#allocation2 + $0x18] sm:$0xff] %v121_v0 }
  0xe2   :  { %v143_v39 = vld [vmem:[#allocation2] sm:$0x3]  ;;  %v250_v2 = vld [vmem:[#allocation2] sm:$0xc]  ;;  %v359_v35 = vld [vmem:[#allocation2] sm:$0x30] }
  0xe3   :  { %v144_v44 = vld [vmem:[#allocation2 + $0x8] sm:$0x3]  ;;  %v254_v5 = vrot.slane %v250_v2, 2  ;;  %v251_v11 = vld [vmem:[#allocation2 + $0x8] sm:$0xc]  ;;  %v363_v36 = vrot.slane %v359_v35, 4 }
  0xe4   :  { %v255_v13 = vrot.slane %v251_v11, 2 }
  0xe7   :  { %v215_v40 = vpop.f32.mrb[0].mxu1 }
  0xe8   :  { %v216_v41 = vadd.f32 %v215_v40, %v143_v39  ;;  %v217_v42 = vpop.f32.mrb[1].mxu1 }
  0xe9   :  { %v218_v45 = vadd.f32 %v217_v42, %v144_v44 }
  0xea   :  { %v1113_v43 = vmul.f32 -1.442695, %v216_v41  ;;  %v360_v41 = vld [vmem:[#allocation2 + $0x8] sm:$0x30] }
  0xeb   :  { %v1114_v52 = vmul.f32 -1.442695, %v218_v45  ;;  %v364_v42 = vrot.slane %v360_v41, 4 }
  0xec   :  { %1314 = vpow2.f32 %v1113_v43 }
  0xed   :  { %1316 = vtanh.f32 %v218_v45 }
  0xf6   :  { %v1315_v46 = vpop.eup %1314 }
  0xf7   :  { %v223_v47 = vadd.f32 1.0, %v1315_v46  ;;  %v1317_v48 = vpop.eup %1316 }
  0xf9   :  { %1318 = vrcp.f32 %v223_v47 }
  0xfa   :  { %1320 = vpow2.f32 %v1114_v52 }
 0x103   :  { %v1319_v49 = vpop.eup %1318 }
 0x104   :  { %v234_v50 = vmul.f32 %v1319_v49, %v1317_v48  ;;  %v1321_v53 = vpop.eup %1320  ;;  %v233_v55 = vmul.f32 0.0, %v1319_v49 }
 0x105   :  { %v230_v54 = vadd.f32 1.0, %v1321_v53 }
 0x106   :  { %236 = vrot.lane.b32.xlu0 %v234_v50, %s1411_s2 }
 0x107   :  { %1322 = vrcp.f32 %v230_v54 }
 0x111   :  { %v1323_v58 = vpop.eup %1322 }
 0x178   :  { %v237_v56 = vpop.permute.xlu0 %236 }
 0x179   :  { %v239_v57 = vadd.f32 %v237_v56, %v233_v55 }
 0x17b   :  { %1324 = vtanh.f32 %v239_v57 }
 0x185   :  { %v1325_v59 = vpop.eup %1324 }
 0x186   :  { %v241_v60 = vmul.f32 %v1325_v59, %v1323_v58  ;;  %v468_v59 = vld [vmem:[#allocation2] sm:$0xc0] }
 0x188   :  { %243 = vrot.lane.b32.xlu0 %v241_v60, %s1411_s2  ;;  %v472_v60 = vrot.slane %v468_v59, 6 }
 0x1fa   :  { %v244_v1 = vpop.permute.xlu0 %243 }
 0x1fb   :  { %247 = vst.msk [vmem:[#allocation3] sm:$0x3] %vm246_vm1, %v244_v1  ;;  %1115 = vmatmul.mubr.msk.f32.vlgmr.msra.gmra.mrb[4].mxu0 %vm145_vm3, %v244_v1 }
 0x1fc   :  { %249 = vst.msk [vmem:[#allocation3 + $0xe] sm:$0x3] %vm248_vm2, %v244_v1  ;;  %1219 = vmatpush1.bf16.msra.mxu0 %v1469_v8  ;;  %542 = vmatprep.mubr.f32.mxu0 %v1410_v3  ;;  %v469_v1 = vld [vmem:[#allocation2 + $0x8] sm:$0xc0] }
 0x1fd   :  { %1221 = vmatprep.subr.bf16.mxu0 %v1481_v12  ;;  %v473_v2 = vrot.slane %v469_v1, 6  ;;  %v789_v1 = vld [vmem:[#allocation2 + $0x10] sm:$0x30] }
 0x200   :  { %1223 = vmatpush1.bf16.msra.mxu0 %v1494_v16 }
 0x201   :  { %1225 = vmatprep.subr.bf16.mxu0 %v1500_v18 }
 0x204   :  { %1227 = vmatpush1.bf16.msra.mxu0 %v1519_v23 }
 0x205   :  { %1229 = vmatprep.subr.bf16.mxu0 %v1522_v24 }
 0x208   :  { %1231 = vmatpush1.bf16.msra.mxu0 %v1533_v27 }
 0x209   :  { %1249 = vmatprep.subr.bf16.mxu0 %v1458_v4 }
 0x2ce   :  { %v326_v6 = vpop.f32.mrb[4].mxu0 }
 0x2cf   :  { %v327_v7 = vadd.f32 %v326_v6, %v254_v5  ;;  %v328_v9 = vpop.f32.mrb[5].mxu0 }
 0x2d0   :  { %v329_v14 = vadd.f32 %v328_v9, %v255_v13 }
 0x2d1   :  { %v1116_v10 = vmul.f32 -1.442695, %v327_v7 }
 0x2d2   :  { %v1117_v22 = vmul.f32 -1.442695, %v329_v14 }
 0x2d3   :  { %1326 = vpow2.f32 %v1116_v10 }
 0x2d4   :  { %1328 = vtanh.f32 %v329_v14 }
 0x2dd   :  { %v1327_v15 = vpop.eup %1326 }
 0x2de   :  { %v334_v17 = vadd.f32 1.0, %v1327_v15  ;;  %v1329_v19 = vpop.eup %1328 }
 0x2e0   :  { %1330 = vrcp.f32 %v334_v17 }
 0x2e1   :  { %1332 = vpow2.f32 %v1117_v22 }
 0x2ea   :  { %v1331_v20 = vpop.eup %1330 }
 0x2eb   :  { %v345_v21 = vmul.f32 %v1331_v20, %v1329_v19  ;;  %v1333_v25 = vpop.eup %1332  ;;  %v344_v28 = vmul.f32 %v1331_v20, %v239_v57 }
 0x2ec   :  { %v341_v26 = vadd.f32 1.0, %v1333_v25 }
 0x2ed   :  { %347 = vrot.lane.b32.xlu1 %v345_v21, %s1411_s2 }
 0x2ee   :  { %1334 = vrcp.f32 %v341_v26  ;;  %v577_v26 = vld [vmem:[#allocation2 + $0x10] sm:$0x3] }
 0x2f8   :  { %v1335_v31 = vpop.eup %1334 }
 0x35f   :  { %v348_v29 = vpop.permute.xlu1 %347 }
 0x360   :  { %v350_v30 = vadd.f32 %v348_v29, %v344_v28 }
 0x362   :  { %1336 = vtanh.f32 %v350_v30 }
 0x36c   :  { %v1337_v32 = vpop.eup %1336 }
 0x36d   :  { %v352_v33 = vmul.f32 %v1337_v32, %v1335_v31  ;;  %v578_v32 = vld [vmem:[#allocation2 + $0x18] sm:$0x3] }
 0x36f   :  { %354 = vrot.lane.b32.xlu1 %v352_v33, %s1411_s2 }
 0x3e1   :  { %v355_v34 = vpop.permute.xlu1 %354 }
 0x3e2   :  { %357 = vst.msk [vmem:[#allocation3 + $0x2] sm:$0x3] %vm246_vm1, %v355_v34  ;;  %1118 = vmatmul.mubr.msk.f32.vlgmr.msra.gmra.mrb[2].mxu1 %vm145_vm3, %v355_v34 }
 0x3e3   :  { %358 = vst.msk [vmem:[#allocation3 + $0xc] sm:$0x3] %vm248_vm2, %v355_v34  ;;  %1235 = vmatpush1.bf16.msra.mxu1 %v1469_v8  ;;  %645 = vmatprep.mubr.f32.mxu1 %v1410_v3 }
 0x3e4   :  { %1237 = vmatprep.subr.bf16.mxu1 %v1481_v12 }
 0x3e7   :  { %1239 = vmatpush1.bf16.msra.mxu1 %v1494_v16 }
 0x3e8   :  { %1241 = vmatprep.subr.bf16.mxu1 %v1500_v18 }
 0x3eb   :  { %1243 = vmatpush1.bf16.msra.mxu1 %v1519_v23 }
 0x3ec   :  { %1245 = vmatprep.subr.bf16.mxu1 %v1522_v24 }
 0x3ef   :  { %1247 = vmatpush1.bf16.msra.mxu1 %v1533_v27 }
 0x3f0   :  { %1265 = vmatprep.subr.bf16.mxu1 %v1458_v4 }
 0x4b5   :  { %v435_v37 = vpop.f32.mrb[2].mxu1 }
 0x4b6   :  { %v436_v38 = vadd.f32 %v435_v37, %v363_v36  ;;  %v437_v39 = vpop.f32.mrb[3].mxu1 }
 0x4b7   :  { %v438_v43 = vadd.f32 %v437_v39, %v364_v42 }
 0x4b8   :  { %v1119_v40 = vmul.f32 -1.442695, %v436_v38 }
 0x4b9   :  { %v1120_v49 = vmul.f32 -1.442695, %v438_v43 }
 0x4ba   :  { %1338 = vpow2.f32 %v1119_v40 }
 0x4bb   :  { %1340 = vtanh.f32 %v438_v43 }
 0x4c4   :  { %v1339_v44 = vpop.eup %1338 }
 0x4c5   :  { %v443_v45 = vadd.f32 1.0, %v1339_v44  ;;  %v1341_v46 = vpop.eup %1340 }
 0x4c7   :  { %1342 = vrcp.f32 %v443_v45 }
 0x4c8   :  { %1344 = vpow2.f32 %v1120_v49  ;;  %v680_v49 = vld [vmem:[#allocation2 + $0x10] sm:$0xc] }
 0x4d1   :  { %v1343_v47 = vpop.eup %1342 }
 0x4d2   :  { %v454_v48 = vmul.f32 %v1343_v47, %v1341_v46  ;;  %v1345_v50 = vpop.eup %1344  ;;  %v453_v52 = vmul.f32 %v1343_v47, %v350_v30 }
 0x4d3   :  { %v450_v51 = vadd.f32 1.0, %v1345_v50  ;;  %v684_v50 = vrot.slane %v680_v49, 2  ;;  %v1011_v49 = vld [vmem:[%s1681_s4 + $0x10] sm:$0xff] }
 0x4d4   :  { %456 = vrot.lane.b32.xlu0 %v454_v48, %s1411_s2 }
 0x4d5   :  { %1346 = vrcp.f32 %v450_v51 }
 0x4df   :  { %v1347_v55 = vpop.eup %1346 }
 0x546   :  { %v457_v53 = vpop.permute.xlu0 %456 }
 0x547   :  { %v459_v54 = vadd.f32 %v457_v53, %v453_v52 }
 0x549   :  { %1348 = vtanh.f32 %v459_v54 }
 0x553   :  { %v1349_v56 = vpop.eup %1348 }
 0x554   :  { %v461_v57 = vmul.f32 %v1349_v56, %v1347_v55 }
 0x556   :  { %463 = vrot.lane.b32.xlu1 %v461_v57, %s1411_s2 }
 0x5c8   :  { %v464_v58 = vpop.permute.xlu1 %463 }
 0x5c9   :  { %466 = vst.msk [vmem:[#allocation3 + $0x4] sm:$0x3] %vm246_vm1, %v464_v58  ;;  %1121 = vmatmul.mubr.msk.f32.vlgmr.msra.gmra.mrb[6].mxu0 %vm145_vm3, %v464_v58 }
 0x5ca   :  { %467 = vst.msk [vmem:[#allocation3 + $0xa] sm:$0x3] %vm248_vm2, %v464_v58  ;;  %1251 = vmatpush1.bf16.msra.mxu0 %v1469_v8  ;;  %754 = vmatprep.mubr.f32.mxu0 %v1410_v3 }
 0x5cb   :  { %1253 = vmatprep.subr.bf16.mxu0 %v1481_v12 }
 0x5ce   :  { %1255 = vmatpush1.bf16.msra.mxu0 %v1494_v16 }
 0x5cf   :  { %1257 = vmatprep.subr.bf16.mxu0 %v1500_v18 }
 0x5d2   :  { %1259 = vmatpush1.bf16.msra.mxu0 %v1519_v23 }
 0x5d3   :  { %1261 = vmatprep.subr.bf16.mxu0 %v1522_v24 }
 0x5d6   :  { %1263 = vmatpush1.bf16.msra.mxu0 %v1533_v27 }
 0x5d7   :  { %1281 = vmatprep.subr.bf16.mxu0 %v1458_v4 }
 0x69c   :  { %v544_v61 = vpop.f32.mrb[6].mxu0 }
 0x69d   :  { %v545_v62 = vadd.f32 %v544_v61, %v472_v60  ;;  %v546_v63 = vpop.f32.mrb[7].mxu0 }
 0x69e   :  { %v547_v5 = vadd.f32 %v546_v63, %v473_v2  ;;  %v793_v2 = vrot.slane %v789_v1, 4 }
 0x69f   :  { %v1122_v0 = vmul.f32 -1.442695, %v545_v62 }
 0x6a0   :  { %v1123_v4 = vmul.f32 -1.442695, %v547_v5 }
 0x6a1   :  { %1350 = vpow2.f32 %v1122_v0 }
 0x6a2   :  { %1352 = vtanh.f32 %v547_v5 }
 0x6ab   :  { %v1351_v6 = vpop.eup %1350 }
 0x6ac   :  { %v552_v7 = vadd.f32 1.0, %v1351_v6  ;;  %v1353_v9 = vpop.eup %1352 }
 0x6ae   :  { %1354 = vrcp.f32 %v552_v7 }
 0x6af   :  { %1356 = vpow2.f32 %v1123_v4 }
 0x6b8   :  { %v1355_v10 = vpop.eup %1354 }
 0x6b9   :  { %v563_v11 = vmul.f32 %v1355_v10, %v1353_v9  ;;  %v1357_v13 = vpop.eup %1356  ;;  %v562_v15 = vmul.f32 %v1355_v10, %v459_v54  ;;  %v790_v10 = vld [vmem:[#allocation2 + $0x18] sm:$0x30] }
 0x6ba   :  { %v559_v14 = vadd.f32 1.0, %v1357_v13 }
 0x6bb   :  { %565 = vrot.lane.b32.xlu0 %v563_v11, %s1411_s2  ;;  %v794_v11 = vrot.slane %v790_v10, 4 }
 0x6bc   :  { %1358 = vrcp.f32 %v559_v14 }
 0x6c6   :  { %v1359_v20 = vpop.eup %1358 }
 0x72d   :  { %v566_v17 = vpop.permute.xlu0 %565 }
 0x72e   :  { %v568_v19 = vadd.f32 %v566_v17, %v562_v15 }
 0x730   :  { %1360 = vtanh.f32 %v568_v19 }
 0x73a   :  { %v1361_v21 = vpop.eup %1360 }
 0x73b   :  { %v570_v22 = vmul.f32 %v1361_v21, %v1359_v20 }
 0x73d   :  { %572 = vrot.lane.b32.xlu1 %v570_v22, %s1411_s2 }
 0x7af   :  { %v573_v25 = vpop.permute.xlu1 %572 }
 0x7b0   :  { %575 = vst.msk [vmem:[#allocation3 + $0x6] sm:$0x3] %vm246_vm1, %v573_v25  ;;  %1124 = vmatmul.mubr.msk.f32.vlgmr.msra.gmra.mrb[4].mxu1 %vm145_vm3, %v573_v25 }
 0x7b1   :  { %576 = vst.msk [vmem:[#allocation3 + $0x8] sm:$0x3] %vm248_vm2, %v573_v25  ;;  %1267 = vmatpush1.bf16.msra.mxu1 %v1469_v8  ;;  %863 = vmatprep.mubr.f32.mxu1 %v1410_v3 }
 0x7b2   :  { %1269 = vmatprep.subr.bf16.mxu1 %v1481_v12 }
 0x7b5   :  { %1271 = vmatpush1.bf16.msra.mxu1 %v1494_v16 }
 0x7b6   :  { %1273 = vmatprep.subr.bf16.mxu1 %v1500_v18 }
 0x7b9   :  { %1275 = vmatpush1.bf16.msra.mxu1 %v1519_v23 }
 0x7ba   :  { %1277 = vmatprep.subr.bf16.mxu1 %v1522_v24 }
 0x7bd   :  { %1279 = vmatpush1.bf16.msra.mxu1 %v1533_v27 }
 0x883   :  { %v647_v28 = vpop.f32.mrb[4].mxu1 }
 0x884   :  { %v648_v29 = vadd.f32 %v647_v28, %v577_v26  ;;  %v649_v30 = vpop.f32.mrb[5].mxu1 }
 0x885   :  { %v650_v33 = vadd.f32 %v649_v30, %v578_v32 }
 0x886   :  { %v1125_v31 = vmul.f32 -1.442695, %v648_v29 }
 0x887   :  { %v1126_v39 = vmul.f32 -1.442695, %v650_v33 }
 0x888   :  { %1362 = vpow2.f32 %v1125_v31 }
 0x889   :  { %1364 = vtanh.f32 %v650_v33  ;;  %v898_v33 = vld [vmem:[#allocation2 + $0x10] sm:$0xc0] }
 0x892   :  { %v1363_v34 = vpop.eup %1362 }
 0x893   :  { %v655_v35 = vadd.f32 1.0, %v1363_v34  ;;  %v1365_v36 = vpop.eup %1364  ;;  %v902_v34 = vrot.slane %v898_v33, 6 }
 0x895   :  { %1366 = vrcp.f32 %v655_v35 }
 0x896   :  { %1368 = vpow2.f32 %v1126_v39  ;;  %v899_v39 = vld [vmem:[#allocation2 + $0x18] sm:$0xc0] }
 0x89f   :  { %v1367_v37 = vpop.eup %1366 }
 0x8a0   :  { %v666_v38 = vmul.f32 %v1367_v37, %v1365_v36  ;;  %v1369_v40 = vpop.eup %1368  ;;  %v665_v42 = vmul.f32 %v1367_v37, %v568_v19 }
 0x8a1   :  { %v662_v41 = vadd.f32 1.0, %v1369_v40  ;;  %v903_v40 = vrot.slane %v899_v39, 6 }
 0x8a2   :  { %668 = vrot.lane.b32.xlu0 %v666_v38, %s1411_s2 }
 0x8a3   :  { %1370 = vrcp.f32 %v662_v41 }
 0x8ad   :  { %v1371_v45 = vpop.eup %1370 }
 0x914   :  { %v669_v43 = vpop.permute.xlu0 %668 }
 0x915   :  { %v671_v44 = vadd.f32 %v669_v43, %v665_v42 }
 0x917   :  { %1372 = vtanh.f32 %v671_v44 }
 0x921   :  { %v1373_v46 = vpop.eup %1372 }
 0x922   :  { %v673_v47 = vmul.f32 %v1373_v46, %v1371_v45 }
 0x924   :  { %675 = vrot.lane.b32.xlu1 %v673_v47, %s1411_s2  ;;  %v1009_v47 = vld [vmem:[%s1681_s4] sm:$0xff] }
 0x996   :  { %v676_v48 = vpop.permute.xlu1 %675 }
 0x997   :  { %678 = vst.msk [vmem:[#allocation3 + $0x8] sm:$0x3] %vm246_vm1, %v676_v48  ;;  %1127 = vmatmul.mubr.msk.f32.vlgmr.msra.gmra.mrb[8].mxu0 %vm145_vm3, %v676_v48 }
 0x998   :  { %679 = vst.msk [vmem:[#allocation3 + $0x6] sm:$0x3] %vm248_vm2, %v676_v48  ;;  %1283 = vmatpush1.bf16.msra.mxu0 %v1469_v8  ;;  %972 = vmatprep.mubr.f32.mxu0 %v1410_v3  ;;  %v681_v3 = vld [vmem:[#allocation2 + $0x18] sm:$0xc]  ;;  %v1010_v48 = vld [vmem:[%s1681_s4 + $0x8] sm:$0xff] }
 0x999   :  { %1285 = vmatprep.subr.bf16.mxu0 %v1481_v12  ;;  %v685_v54 = vrot.slane %v681_v3, 2 }
 0x99c   :  { %1287 = vmatpush1.bf16.msra.mxu0 %v1494_v16 }
 0x99d   :  { %1289 = vmatprep.subr.bf16.mxu0 %v1500_v18 }
 0x9a0   :  { %1291 = vmatpush1.bf16.msra.mxu0 %v1519_v23 }
 0x9a1   :  { %1293 = vmatprep.subr.bf16.mxu0 %v1522_v24 }
 0x9a4   :  { %1295 = vmatpush1.bf16.msra.mxu0 %v1533_v27 }
 0xa6a   :  { %v756_v51 = vpop.f32.mrb[8].mxu0 }
 0xa6b   :  { %v757_v52 = vadd.f32 %v756_v51, %v684_v50  ;;  %v758_v53 = vpop.f32.mrb[9].mxu0  ;;  %v1296_v50 = vpack.c.bf16 %v1010_v48, %v1009_v47  ;;  %v1012_v51 = vld [vmem:[%s1681_s4 + $0x18] sm:$0xff] }
 0xa6c   :  { %v759_v12 = vadd.f32 %v758_v53, %v685_v54 }
 0xa6d   :  { %v1128_v8 = vmul.f32 -1.442695, %v757_v52  ;;  %v1300_v52 = vpack.c.bf16 %v1012_v51, %v1011_v49  ;;  %1297 = vmatprep.subr.bf16.mxu1 %v1296_v50 }
 0xa6e   :  { %v1129_v24 = vmul.f32 -1.442695, %v759_v12 }
 0xa6f   :  { %1374 = vpow2.f32 %v1128_v8 }
 0xa70   :  { %1376 = vtanh.f32 %v759_v12 }
 0xa79   :  { %v1375_v55 = vpop.eup %1374 }
 0xa7a   :  { %v764_v16 = vadd.f32 1.0, %v1375_v55  ;;  %v1377_v18 = vpop.eup %1376 }
 0xa7c   :  { %1378 = vrcp.f32 %v764_v16  ;;  %v1013_v16 = vld [vmem:[%s1681_s4 + $0x20] sm:$0xff] }
 0xa7d   :  { %1380 = vpow2.f32 %v1129_v24  ;;  %v1016_v24 = vld [vmem:[%s1681_s4 + $0x38] sm:$0xff] }
 0xa86   :  { %v1379_v23 = vpop.eup %1378 }
 0xa87   :  { %v775_v56 = vmul.f32 %v1379_v23, %v1377_v18  ;;  %v1381_v27 = vpop.eup %1380  ;;  %v774_v58 = vmul.f32 %v1379_v23, %v671_v44  ;;  %v1014_v18 = vld [vmem:[%s1681_s4 + $0x28] sm:$0xff] }
 0xa88   :  { %v771_v57 = vadd.f32 1.0, %v1381_v27  ;;  %v1304_v23 = vpack.c.bf16 %v1014_v18, %v1013_v16 }
 0xa89   :  { %777 = vrot.lane.b32.xlu0 %v775_v56, %s1411_s2  ;;  %v1015_v56 = vld [vmem:[%s1681_s4 + $0x30] sm:$0xff] }
 0xa8a   :  { %1382 = vrcp.f32 %v771_v57  ;;  %v1308_v27 = vpack.c.bf16 %v1016_v24, %v1015_v56 }
 0xa94   :  { %v1383_v61 = vpop.eup %1382 }
 0xafb   :  { %v778_v59 = vpop.permute.xlu0 %777 }
 0xafc   :  { %v780_v60 = vadd.f32 %v778_v59, %v774_v58 }
 0xafe   :  { %1384 = vtanh.f32 %v780_v60 }
 0xb08   :  { %v1385_v62 = vpop.eup %1384 }
 0xb09   :  { %v782_v63 = vmul.f32 %v1385_v62, %v1383_v61 }
 0xb0b   :  { %784 = vrot.lane.b32.xlu1 %v782_v63, %s1411_s2  ;;  %v1136_v63 = vld [vmem:[%s1682_s5] ss:$0 sm:$0xff] }
 0xb7d   :  { %v785_v0 = vpop.permute.xlu1 %784 }
 0xb7e   :  { %787 = vst.msk [vmem:[#allocation3 + $0xa] sm:$0x3] %vm246_vm1, %v785_v0  ;;  %1130 = vmatmul.mubr.msk.f32.vlgmr.msra.gmra.mrb[6].mxu1 %vm145_vm3, %v785_v0 }
 0xb7f   :  { %788 = vst.msk [vmem:[#allocation3 + $0x4] sm:$0x3] %vm248_vm2, %v785_v0  ;;  %1299 = vmatpush3.bf16.msra.mxu1 %v1296_v50 }
 0xb80   :  { %1301 = vmatprep.subr.bf16.mxu1 %v1300_v52 }
 0xb83   :  { %1303 = vmatpush3.bf16.msra.mxu1 %v1300_v52 }
 0xb84   :  { %1305 = vmatprep.subr.bf16.mxu1 %v1304_v23 }
 0xb87   :  { %1307 = vmatpush3.bf16.msra.mxu1 %v1304_v23 }
 0xb88   :  { %1309 = vmatprep.subr.bf16.mxu1 %v1308_v27 }
 0xb8b   :  { %1311 = vmatpush3.bf16.msra.mxu1 %v1308_v27 }
 0xc51   :  { %v865_v5 = vpop.f32.mrb[6].mxu1 }
 0xc52   :  { %v866_v6 = vadd.f32 %v865_v5, %v793_v2  ;;  %v867_v7 = vpop.f32.mrb[7].mxu1 }
 0xc53   :  { %v868_v4 = vadd.f32 %v867_v7, %v794_v11 }
 0xc54   :  { %v1131_v9 = vmul.f32 -1.442695, %v866_v6 }
 0xc55   :  { %v1132_v20 = vmul.f32 -1.442695, %v868_v4 }
 0xc56   :  { %1386 = vpow2.f32 %v1131_v9 }
 0xc57   :  { %1388 = vtanh.f32 %v868_v4 }
 0xc60   :  { %v1387_v13 = vpop.eup %1386 }
 0xc61   :  { %v873_v14 = vadd.f32 1.0, %v1387_v13  ;;  %v1389_v15 = vpop.eup %1388 }
 0xc63   :  { %1390 = vrcp.f32 %v873_v14 }
 0xc64   :  { %1392 = vpow2.f32 %v1132_v20 }
 0xc6d   :  { %v1391_v17 = vpop.eup %1390 }
 0xc6e   :  { %v884_v19 = vmul.f32 %v1391_v17, %v1389_v15  ;;  %v1393_v21 = vpop.eup %1392  ;;  %v883_v25 = vmul.f32 %v1391_v17, %v780_v60 }
 0xc6f   :  { %v880_v22 = vadd.f32 1.0, %v1393_v21 }
 0xc70   :  { %886 = vrot.lane.b32.xlu0 %v884_v19, %s1411_s2 }
 0xc71   :  { %1394 = vrcp.f32 %v880_v22 }
 0xc7b   :  { %v1395_v29 = vpop.eup %1394 }
 0xce2   :  { %v887_v26 = vpop.permute.xlu0 %886 }
 0xce3   :  { %v889_v28 = vadd.f32 %v887_v26, %v883_v25 }
 0xce5   :  { %1396 = vtanh.f32 %v889_v28 }
 0xcef   :  { %v1397_v30 = vpop.eup %1396 }
 0xcf0   :  { %v891_v31 = vmul.f32 %v1397_v30, %v1395_v29 }
 0xcf2   :  { %893 = vrot.lane.b32.xlu1 %v891_v31, %s1411_s2 }
 0xd64   :  { %v894_v32 = vpop.permute.xlu1 %893 }
 0xd65   :  { %896 = vst.msk [vmem:[#allocation3 + $0xc] sm:$0x3] %vm246_vm1, %v894_v32  ;;  %1133 = vmatmul.mubr.msk.f32.vlgmr.msra.gmra.mrb[10].mxu0 %vm145_vm3, %v894_v32 }
 0xd66   :  { %897 = vst.msk [vmem:[#allocation3 + $0x2] sm:$0x3] %vm248_vm2, %v894_v32 }
 0xe38   :  { %v974_v35 = vpop.f32.mrb[10].mxu0 }
 0xe39   :  { %v975_v36 = vadd.f32 %v974_v35, %v902_v34  ;;  %v976_v37 = vpop.f32.mrb[11].mxu0 }
 0xe3a   :  { %v977_v41 = vadd.f32 %v976_v37, %v903_v40 }
 0xe3b   :  { %v1134_v38 = vmul.f32 -1.442695, %v975_v36 }
 0xe3c   :  { %v1135_v53 = vmul.f32 -1.442695, %v977_v41 }
 0xe3d   :  { %1398 = vpow2.f32 %v1134_v38 }
 0xe3e   :  { %1400 = vtanh.f32 %v977_v41 }
 0xe47   :  { %v1399_v42 = vpop.eup %1398 }
 0xe48   :  { %v982_v43 = vadd.f32 1.0, %v1399_v42  ;;  %v1401_v44 = vpop.eup %1400 }
 0xe4a   :  { %1402 = vrcp.f32 %v982_v43 }
 0xe4b   :  { %1404 = vpow2.f32 %v1135_v53 }
 0xe54   :  { %v1403_v45 = vpop.eup %1402 }
 0xe55   :  { %v993_v46 = vmul.f32 %v1403_v45, %v1401_v44  ;;  %v1405_v8 = vpop.eup %1404  ;;  %v992_v54 = vmul.f32 %v1403_v45, %v889_v28 }
 0xe56   :  { %v989_v3 = vadd.f32 1.0, %v1405_v8 }
 0xe57   :  { %995 = vrot.lane.b32.xlu0 %v993_v46, %s1411_s2 }
 0xe58   :  { %1406 = vrcp.f32 %v989_v3 }
 0xe62   :  { %v1407_v57 = vpop.eup %1406 }
 0xec9   :  { %v996_v12 = vpop.permute.xlu0 %995 }
 0xeca   :  { %v998_v55 = vadd.f32 %v996_v12, %v992_v54 }
 0xecc   :  { %1408 = vtanh.f32 %v998_v55 }
 0xed6   :  { %v1409_v58 = vpop.eup %1408 }
 0xed7   :  { %v1000_v59 = vmul.f32 %v1409_v58, %v1407_v57 }
 0xed9   :  { %1002 = vrot.lane.b32.xlu1 %v1000_v59, %s1411_s2 }
 0xf4b   :  { %v1003_v60 = vpop.permute.xlu1 %1002 }
 0xf4c   :  { %1005 = vst.msk [vmem:[#allocation3 + $0xe] sm:$0x3] %vm246_vm1, %v1003_v60 }
 0xf4d   :  { %1006 = vst.msk [vmem:[#allocation3] sm:$0x3] %vm248_vm2, %v1003_v60 }
 0xf53   :  { %v1008_v62 = vld [vmem:[#allocation3 + $0x8] sm:$0xff] }
 0xf54   :  { %v1007_v61 = vld [vmem:[#allocation3] sm:$0xff] }
 0xf55   :  { %1165 = vmatprep.mubr.msk.f32.mxu1 %vm145_vm3, %v1007_v61 }
 0xf56   :  { %1166 = vmatmul.mubr.msk.f32.vlgmr.msra.gmra.mrb[8].mxu1 %vm145_vm3, %v1008_v62 }
0x1029   :  { %v1167_v0 = vpop.f32.mrb[8].mxu1 }
0x102a   :  { %v1102_v1 = vadd.f32 %v1167_v0, %v1136_v63  ;;  %v1096_v2 = vpop.f32.mrb[9].mxu1 }
0x102b   :  { %v1097_v5 = vadd.f32 %v1136_v63, %v1096_v2 }
0x102c   :  { %1106 = vst [vmem:[%s1683_s6 + $0x8] sm:$0xff] %v1102_v1 }
0x102d   :  { %1105 = vst [vmem:[%s1683_s6] sm:$0xff] %v1097_v5 }

</bundles_post_ra>
